<compile_context>
chip_gen: v5e
topology: v5e:2x2
jax: 0.10.0
libtpu: 0.0.40
codegen_flags: <defaults>
</compile_context>

<pallas_src>
import jax
import jax.numpy as jnp
from jax.experimental import pallas as pl
from jax.experimental.pallas import tpu as pltpu


# --------------------------------- kernel -------------------------------------
def _regression_target_kernel(x_ref, mask_ref, val_ref, out_ref):
    x = x_ref[...]                      # (T, D) f32, hidden on lanes
    m = mask_ref[...] != 0              # (T, 1)  bool, token-major
    v = val_ref[...]                    # (T, 1)  f32, token-major
    # torch.where(mask, x * v, 0.0): keep the select (not a multiply-by-mask)
    # so NaN/Inf in masked-out rows are zeroed exactly like the reference.
    out_ref[...] = jnp.where(m, x * v, 0.0)


# --------------------------------- wrapper -------------------------------------
def _pick_tile_rows(n, d, itemsize=4, target_bytes=4 << 20):
    """Largest row tile that keeps one (tile, D) f32 block ~<= target_bytes."""
    if n * d * itemsize <= target_bytes:
        return n                                   # single / full-array tile
    t = (target_bytes // (d * itemsize)) // 8 * 8  # multiple of 8 sublanes
    return int(max(8, min(t, n)))


def regression_target_embedder(input_embeddings, target_mask, target_values):
    """input_embeddings: (..., D) float; target_mask: (...) bool; target_values: (...) float."""
    orig_shape = input_embeddings.shape
    d = orig_shape[-1]
    n = 1
    for s in orig_shape[:-1]:
        n *= s

    x = input_embeddings.reshape(n, d).astype(jnp.float32)
    m = target_mask.reshape(n, 1).astype(jnp.int32)     # bool -> i32 for clean VMEM layout
    v = target_values.reshape(n, 1).astype(jnp.float32)

    tile = _pick_tile_rows(n, d)
    n_pad = ((n + tile - 1) // tile) * tile
    if n_pad != n:
        pad = n_pad - n
        x = jnp.pad(x, ((0, pad), (0, 0)))
        m = jnp.pad(m, ((0, pad), (0, 0)))
        v = jnp.pad(v, ((0, pad), (0, 0)))

    out = pl.pallas_call(
        _regression_target_kernel,
        grid=(n_pad // tile,),
        in_specs=[
            pl.BlockSpec((tile, d), lambda i: (i, 0)),   # input embeddings
            pl.BlockSpec((tile, 1), lambda i: (i, 0)),   # mask, token-major
            pl.BlockSpec((tile, 1), lambda i: (i, 0)),   # values, token-major
        ],
        out_specs=pl.BlockSpec((tile, d), lambda i: (i, 0)),
        out_shape=jax.ShapeDtypeStruct((n_pad, d), jnp.float32),
        compiler_params=pltpu.CompilerParams(
            dimension_semantics=("parallel",)),
    )(x, m, v)

    if n_pad != n:
        out = out[:n]
    return out.reshape(orig_shape)


# --------------------------------- main ------------------------------------------
if __name__ == "__main__":
    key = jax.random.PRNGKey(0)
    k1, k2, k3 = jax.random.split(key, 3)

    B, L, D = 2, 8, 32
    input_embeddings = jax.random.normal(k1, (B, L, D), jnp.float32)
    target_mask = jax.random.bernoulli(k2, 0.5, (B, L))
    target_values = jax.random.normal(k3, (B, L), jnp.float32)

    out = regression_target_embedder(input_embeddings, target_mask, target_values)
    out = jax.block_until_ready(out)

    # Reference check (torch.where semantics).
    ref = jnp.where(target_mask[..., None],
                    input_embeddings * target_values[..., None], 0.0)
    assert out.shape == (B, L, D)
    assert jnp.allclose(out, ref, atol=1e-6, rtol=1e-6)
    print("KERNEL_OK")
</pallas_src>

<mosaic_0001>
module attributes {stable_mosaic.version = 11 : i64} {
  func.func @_regression_target_kernel(%arg0: i32, %arg1: memref<16x32xf32, #tpu.memory_space<vmem>>, %arg2: memref<16x1xi32, #tpu.memory_space<vmem>>, %arg3: memref<16x1xf32, #tpu.memory_space<vmem>>, %arg4: memref<16x32xf32, #tpu.memory_space<vmem>>) attributes {dimension_semantics = [#tpu.dimension_semantics<parallel>], iteration_bounds = array<i64: 1>, scalar_prefetch = 0 : i64, scratch_operands = 0 : i64, tpu.core_type = #tpu.core_type<tc>, window_params = [{transform_indices = @transform_0, window_bounds = array<i64: 16, 32>}, {transform_indices = @transform_1, window_bounds = array<i64: 16, 1>}, {transform_indices = @transform_2, window_bounds = array<i64: 16, 1>}, {transform_indices = @transform_3, window_bounds = array<i64: 16, 32>}]} {
    %c0 = arith.constant 0 : index
    %c0_0 = arith.constant 0 : index
    %0 = vector.load %arg1[%c0, %c0_0] : memref<16x32xf32, #tpu.memory_space<vmem>>, vector<16x32xf32>
    %c0_1 = arith.constant 0 : index
    %c0_2 = arith.constant 0 : index
    %1 = vector.load %arg2[%c0_1, %c0_2] : memref<16x1xi32, #tpu.memory_space<vmem>>, vector<16x1xi32>
    %c0_i32 = arith.constant 0 : i32
    %2 = vector.broadcast %c0_i32 : i32 to vector<16x1xi32>
    %3 = arith.cmpi ne, %1, %2 : vector<16x1xi32>
    %c0_3 = arith.constant 0 : index
    %c0_4 = arith.constant 0 : index
    %4 = vector.load %arg3[%c0_3, %c0_4] : memref<16x1xf32, #tpu.memory_space<vmem>>, vector<16x1xf32>
    %5 = vector.broadcast %4 : vector<16x1xf32> to vector<16x32xf32>
    %6 = arith.mulf %0, %5 : vector<16x32xf32>
    %cst = arith.constant 0.000000e+00 : f32
    %7 = vector.shape_cast %3 : vector<16x1xi1> to vector<16x1xi1>
    %8 = vector.broadcast %7 : vector<16x1xi1> to vector<16x32xi1>
    %9 = vector.broadcast %cst : f32 to vector<16x32xf32>
    %10 = arith.select %8, %6, %9 : vector<16x32xi1>, vector<16x32xf32>
    %c0_5 = arith.constant 0 : index
    %c0_6 = arith.constant 0 : index
    %11 = vector.load %arg4[%c0_5, %c0_6] : memref<16x32xf32, #tpu.memory_space<vmem>>, vector<16x32xf32>
    tpu.vector_store %arg4[%c0_5, %c0_6], %10 {strides = array<i32>} : memref<16x32xf32, #tpu.memory_space<vmem>>, vector<16x32xf32>,
    return
  }
  func.func @transform_0(%arg0: i32) -> (i32, i32) {
    %c0_i32 = arith.constant 0 : i32
    %c0_i32_0 = arith.constant 0 : i32
    return %arg0, %c0_i32 : i32, i32
  }
  func.func @transform_1(%arg0: i32) -> (i32, i32) {
    %c0_i32 = arith.constant 0 : i32
    %c0_i32_0 = arith.constant 0 : i32
    return %arg0, %c0_i32 : i32, i32
  }
  func.func @transform_2(%arg0: i32) -> (i32, i32) {
    %c0_i32 = arith.constant 0 : i32
    %c0_i32_0 = arith.constant 0 : i32
    return %arg0, %c0_i32 : i32, i32
  }
  func.func @transform_3(%arg0: i32) -> (i32, i32) {
    %c0_i32 = arith.constant 0 : i32
    %c0_i32_0 = arith.constant 0 : i32
    return %arg0, %c0_i32 : i32, i32
  }
}

</mosaic_0001>

<bundles_post_ra>
// kernel: tpu_custom_call.1
= control target key start
LH: loop header
LB: loop body
LE: loop exit
PB: predicated region body
PF: predicated region fallthrough
CT: control target
= control target key end

     0   :  { %v100_v2 = vmov 0   ;;  %s147_s0 = inlined_call_operand.vmem [shape: f32[16,32], index: 0, kind: input, shape index: {}]   ;;  %s148_s1 = inlined_call_operand.vmem [shape: s32[16,1], index: 1, kind: input, shape index: {}]   ;;  %s149_s2 = inlined_call_operand.vmem [shape: f32[16,1], index: 2, kind: input, shape index: {}]   ;;  %s150_s3 = inlined_call_operand.hbm [shape: f32[16,32], index: 3, kind: output, shape index: {}]  }
   0x1   :  { %v21_v0 = vld [vmem:[%s149_s2] sm:$0xff]  ;;  %72 = vset.pattern.permute.xlu0 %v100_v2  ;;  %73 = vset.pattern.permute.xlu1 %v100_v2 }
   0x2   :  { %v17_v1 = vld [vmem:[%s148_s1] sm:$0xff] }
   0x3   :  { %vm19_vm0 = vcmp.ne.s32.totalorder %v17_v1, 0 }
   0x4   :  { %8 = vsyncpa [#allocation3], 0  ;;  %25 = vperm.xlu0 %72, %v21_v0   ;;  %v35_v3 = vsel %vm19_vm0, 1, %v100_v2  ;;  %v18_v4 = vld [vmem:[%s148_s1 + $0x8] sm:$0xff]  ;;  %v15_v7 = vld [vmem:[%s147_s0] sm:$0xff]  ;;  %vm47_vm2 = vcmask 261120  }
   0x5   :  { %38 = vperm.xlu1 %73, %v35_v3   ;;  %vm20_vm1 = vcmp.ne.s32.totalorder %v18_v4, 0  ;;  %v22_v5 = vld [vmem:[%s149_s2 + $0x8] sm:$0xff]  ;;  %s101_s2 = smov [#allocation2]   ;;  %s56_s26 = sshll.u32 %s150_s3, 4  ;;  %s57_s26 = int_to_ptr.hbm [resolvable:$true] %s56_s26 }
   0x6   :  { %v36_v6 = vsel %vm20_vm1, 1, %v100_v2  ;;  %v16_v12 = vld [vmem:[%s147_s0 + $0x8] sm:$0xff]  ;;  %s54_s23 = sshll.u32 %s101_s2, 4  ;;  %s102_s27 = smov 128   ;;  %s55_s23 = int_to_ptr.vmem [resolvable:$true] %s54_s23 }
   0x7   :  { %s103_s28 = smov 8  }
   0xc   :  { %30 = vperm.xlu0 %72, %v22_v5  }
   0xd   :  { %41 = vperm.xlu1 %73, %v36_v6  }
  0x76   :  { %v26_v8 = vpop.permute.xlu0 %25 }
  0x77   :  { %v33_v9 = vmul.f32 %v26_v8, %v15_v7  ;;  %v39_v10 = vpop.permute.xlu1 %38 }
  0x78   :  { %vm43_vm3 = vcmp.eq.s32.totalorder %v39_v10, 1 }
  0x79   :  { %v45_v11 = vsel %vm43_vm3, %v33_v9, 0.0 }
  0x7a   :  { %48 = vst.msk [vmem:[#allocation2] sm:$0xff] %vm47_vm2, %v45_v11 }
  0x7e   :  { %v31_v13 = vpop.permute.xlu0 %30 }
  0x7f   :  { %v34_v14 = vmul.f32 %v31_v13, %v16_v12  ;;  %v42_v15 = vpop.permute.xlu1 %41 }
  0x80   :  { %vm44_vm4 = vcmp.eq.s32.totalorder %v42_v15, 1 }
  0x81   :  { %v46_v16 = vsel %vm44_vm4, %v34_v14, 0.0 }
  0x82   :  { %49 = vst.msk [vmem:[#allocation2 + $0x8] sm:$0xff] %vm47_vm2, %v46_v16 }
  0x83   :  { %62 = dma.vmem_to_hbm [thread:$0]  %s55_s23, 256, %s57_s26, [#allocation3], %s102_s27, %s102_s27, %s103_s28  }
  0x84   :  { %98 = dma.done.wait [#allocation3], 256  }
  0x85   :  { %99 = vsyncadd [#allocation3], 4294967040 }
  0x86   :  { %67 = vsyncpa [#allocation3], 1 }

</bundles_post_ra>
